<compile_context>
chip_gen: v5e
topology: v5e:2x2
jax: 0.10.0
libtpu: 0.0.40
codegen_flags: <defaults>
</compile_context>

<pallas_src>
import functools

import jax
import jax.numpy as jnp
from jax.experimental import pallas as pl
from jax.experimental.pallas import tpu as pltpu


def _round_up(x, m):
    return ((x + m - 1) // m) * m


# --------------------------------------------------------------------------
# Kernels
# --------------------------------------------------------------------------

def _linear_kernel_acc(x_ref, w_ref, o_ref, acc_ref):
    """General kernel: grid = (M blocks, N blocks, K blocks), K innermost.

    x_ref  : (tm, tk)        activation tile
    w_ref  : (tk, tn)        weight tile (pre-transposed [d_in, d_out] layout)
    o_ref  : (tm, tn)        output tile
    acc_ref: (tm, tn) f32    accumulator, persistent across the K axis
    """

    @pl.when(pl.program_id(2) == 0)
    def _():
        acc_ref[...] = jnp.zeros_like(acc_ref)

    acc_ref[...] += jnp.dot(
        x_ref[...], w_ref[...], preferred_element_type=jnp.float32
    )

    @pl.when(pl.program_id(2) == pl.num_programs(2) - 1)
    def _():
        o_ref[...] = acc_ref[...].astype(o_ref.dtype)


def _linear_kernel_single_k(x_ref, w_ref, o_ref):
    """Whole (padded) K fits one tile: no accumulator VMEM round-trip."""
    o_ref[...] = jnp.dot(
        x_ref[...], w_ref[...], preferred_element_type=jnp.float32
    ).astype(o_ref.dtype)


# --------------------------------------------------------------------------
# Static tile selection (pure Python on static shapes)
# --------------------------------------------------------------------------

def _pick_lane_tile(dim_pad128, pref):
    """Tile for a lane (last-dim) axis.  `dim_pad128` is already a 128-multiple.

    Keep the tile large: prefer the biggest tile whose zero-pad strip is
    <= 12.5% of the dim; otherwise pick the tile minimizing total padding
    (tie-break: larger tile).  Never collapses to 128 for awkward dims unless
    that is genuinely the least-padding choice.
    """
    if dim_pad128 <= pref:
        return dim_pad128           # whole dim as a single (lane-dense) block
    best_t, best_key = 128, None
    for t in range(128, pref + 1, 128):
        padded = _round_up(dim_pad128, t)
        waste_ok = (padded - dim_pad128) * 8 <= dim_pad128
        key = (0 if waste_ok else 1, padded, -t)
        if best_key is None or key < best_key:
            best_key, best_t = key, t
    return best_t


def _nk_tiles(d_in, d_out, w_dtype):
    isz = jnp.dtype(w_dtype).itemsize
    tn_pref = 1024
    tk_pref = 2048 if isz <= 2 else 1024   # bigger K tile for 16-bit weights
    tn = _pick_lane_tile(_round_up(d_out, 128), tn_pref)
    tk = _pick_lane_tile(_round_up(d_in, 128), tk_pref)
    return tn, tk


def _pick_tm(M, m_align, Kp, Np, tn, x_isz, w_isz, o_isz, cap=512):
    """Pick tm by minimizing modeled HBM traffic (x re-reads scale with Np/tn,
    weight re-reads scale with Mp/tm, plus output writeback of padded rows)."""
    Ma = _round_up(max(M, 1), m_align)
    cands = {t for t in (512, 384, 256, 192, 128, 64, 32, 16, 8)
             if t % m_align == 0 and t <= min(cap, Ma)}
    if Ma <= cap:
        cands.add(Ma)
    if not cands:
        cands = {m_align}
    nn = Np // tn
    best_t, best_key = None, None
    for t in sorted(cands):
        Mp = _round_up(Ma, t)
        hbm = Mp * Kp * x_isz * nn           # activation reads
        hbm += Np * Kp * w_isz * (Mp // t)   # weight reads
        hbm += Mp * Np * o_isz               # output writeback
        key = (hbm, -t)
        if best_key is None or key < best_key:
            best_key, best_t = key, t
    return best_t


# --------------------------------------------------------------------------
# One-time weight preparation (amortized across all forward calls)
# --------------------------------------------------------------------------

def prepare_weight(weight):
    """[d_out, d_in] (PyTorch layout) -> padded [Kp, Np] in [d_in, d_out] layout.

    Single HBM relayout at parameter-init time; removes the per-call weight
    pad and guarantees a canonical, transpose-free MXU matmul in the kernel.
    """
    d_out, d_in = weight.shape
    tn, tk = _nk_tiles(d_in, d_out, weight.dtype)
    Kp = _round_up(_round_up(d_in, 128), tk)
    Np = _round_up(_round_up(d_out, 128), tn)
    w_t = jnp.transpose(weight)  # [d_in, d_out], materialized once
    if (Kp, Np) != (d_in, d_out):
        w_t = jnp.pad(w_t, ((0, Kp - d_in), (0, Np - d_out)))
    return w_t, tn, tk


# --------------------------------------------------------------------------
# Forward
# --------------------------------------------------------------------------

@functools.partial(jax.jit, static_argnums=(2, 3, 4, 5))
def _linear_apply(x, w_prepared, d_in, d_out, tn, tk):
    orig_shape = x.shape
    assert orig_shape[-1] == d_in, "last dim of x must equal in_features"
    Kp, Np = w_prepared.shape

    x2d = x.reshape(-1, d_in)
    M = x2d.shape[0]

    x_isz = jnp.dtype(x.dtype).itemsize
    w_isz = jnp.dtype(w_prepared.dtype).itemsize
    out_dtype = x.dtype
    o_isz = jnp.dtype(out_dtype).itemsize
    m_align = max(8, 32 // x_isz)          # sublane packing: 8/16/32 for 32/16/8-bit

    tm = _pick_tm(M, m_align, Kp, Np, tn, x_isz, w_isz, o_isz)
    Mp = _round_up(_round_up(M, m_align), tm)

    # Only the activation is padded per call (static-shape check => zero extra
    # HBM traffic when already aligned).  Zero K columns contribute nothing.
    x_p = x2d
    if (Mp, Kp) != (M, d_in):
        x_p = jnp.pad(x2d, ((0, Mp - M), (0, Kp - d_in)))

    nm, nn, nk = Mp // tm, Np // tn, Kp // tk

    # Double-buffered VMEM footprint; raise the scoped-VMEM limit above the
    # v5e 16 MiB default, cap well below v7x's 64 MiB physical per TC.
    buf_bytes = 2 * tm * tk * x_isz + 2 * tk * tn * w_isz + 2 * tm * tn * o_isz
    if nk > 1:
        buf_bytes += tm * tn * 4
    vmem_limit = min(max(int(buf_bytes * 1.5) + (8 << 20), 32 << 20), 56 << 20)

    cost = pl.CostEstimate(
        flops=2 * Mp * Np * Kp,
        transcendentals=0,
        bytes_accessed=(
            Mp * Kp * x_isz * nn + Np * Kp * w_isz * nm + Mp * Np * o_isz
        ),
    )

    # NOTE: on v7x (2 TCs), the "parallel" M/N axes shard across cores whenever
    # nm or nn >= 2; for tiny single-block problems one core is idle by design.
    if nk == 1:
        out = pl.pallas_call(
            _linear_kernel_single_k,
            out_shape=jax.ShapeDtypeStruct((Mp, Np), out_dtype),
            grid_spec=pltpu.PrefetchScalarGridSpec(
                num_scalar_prefetch=0,
                grid=(nm, nn),
                in_specs=[
                    pl.BlockSpec((tm, tk), lambda i, j: (i, 0)),   # x tile
                    pl.BlockSpec((tk, tn), lambda i, j: (0, j)),   # weight tile
                ],
                out_specs=pl.BlockSpec((tm, tn), lambda i, j: (i, j)),
            ),
            compiler_params=pltpu.CompilerParams(
                dimension_semantics=("parallel", "parallel"),
                vmem_limit_bytes=vmem_limit,
            ),
            cost_estimate=cost,
        )(x_p, w_prepared)
    else:
        out = pl.pallas_call(
            _linear_kernel_acc,
            out_shape=jax.ShapeDtypeStruct((Mp, Np), out_dtype),
            grid_spec=pltpu.PrefetchScalarGridSpec(
                num_scalar_prefetch=0,
                grid=(nm, nn, nk),
                in_specs=[
                    pl.BlockSpec((tm, tk), lambda i, j, k: (i, k)),   # x tile
                    pl.BlockSpec((tk, tn), lambda i, j, k: (k, j)),   # weight tile
                ],
                out_specs=pl.BlockSpec((tm, tn), lambda i, j, k: (i, j)),
                scratch_shapes=[pltpu.VMEM((tm, tn), jnp.float32)],
            ),
            compiler_params=pltpu.CompilerParams(
                dimension_semantics=("parallel", "parallel", "arbitrary"),
                vmem_limit_bytes=vmem_limit,
            ),
            cost_estimate=cost,
        )(x_p, w_prepared)

    y2d = out
    if (Mp, Np) != (M, d_out):
        y2d = out[:M, :d_out]
    return y2d.reshape(*orig_shape[:-1], d_out)


# --------------------------------------------------------------------------
# Module-equivalent wrapper
# --------------------------------------------------------------------------

class PallasLinear:
    """Functional equivalent of the bias-free PyTorch Linear module."""

    def __init__(self, in_features, out_features, *, key, dtype=jnp.float32):
        self.in_features = in_features
        self.out_features = out_features
        # Matches nn.init.trunc_normal_(W, mean=0, std=std, a=-3*std, b=3*std).
        std = (2.0 / (in_features + out_features)) ** 0.5
        w = jax.random.truncated_normal(
            key, -3.0, 3.0, (out_features, in_features), dtype=jnp.float32
        ) * std
        self.weight = w.astype(dtype)              # PyTorch layout [d_out, d_in]
        # One-time relayout + pad, amortized across all forward calls.
        self.w_prepared, self.tn, self.tk = prepare_weight(self.weight)

    def __call__(self, x):
        return _linear_apply(
            x, self.w_prepared, self.in_features, self.out_features,
            self.tn, self.tk,
        )


if __name__ == "__main__":
    key = jax.random.PRNGKey(0)
    k1, k2, k3, kx1, kx2, kx3 = jax.random.split(key, 6)

    # 1) Small, tile-aligned case: batch=2, seq=8, d_in=32, d_out=64.
    lin1 = PallasLinear(32, 64, key=k1)
    x1 = jax.random.normal(kx1, (2, 8, 32), dtype=jnp.float32)
    y1 = jax.block_until_ready(lin1(x1))
    r1 = jnp.einsum("...d,od->...o", x1, lin1.weight)
    assert y1.shape == (2, 8, 64)
    assert jnp.allclose(y1, r1, atol=1e-4, rtol=1e-4)

    # 2) Tile-unaligned shapes: exercises activation padding + output slicing.
    lin2 = PallasLinear(40, 72, key=k2)
    x2 = jax.random.normal(kx2, (3, 5, 40), dtype=jnp.float32)
    y2 = jax.block_until_ready(lin2(x2))
    r2 = jnp.einsum("...d,od->...o", x2, lin2.weight)
    assert y2.shape == (3, 5, 72)
    assert jnp.allclose(y2, r2, atol=1e-4, rtol=1e-4)

    # 3) Larger K: exercises the multi-block K reduction (f32 VMEM accumulator).
    lin3 = PallasLinear(2304, 256, key=k3)
    x3 = jax.random.normal(kx3, (2, 8, 2304), dtype=jnp.float32)
    y3 = jax.block_until_ready(lin3(x3))
    r3 = jnp.einsum("...d,od->...o", x3, lin3.weight)
    assert y3.shape == (2, 8, 256)
    assert jnp.allclose(y3, r3, atol=2e-2, rtol=2e-2)

    print("KERNEL_OK")
</pallas_src>

<mosaic_0001>
module attributes {stable_mosaic.version = 11 : i64} {
  func.func @_linear_kernel_single_k(%arg0: i32, %arg1: i32, %arg2: memref<16x128xf32, #tpu.memory_space<vmem>>, %arg3: memref<128x128xf32, #tpu.memory_space<vmem>>, %arg4: memref<16x128xf32, #tpu.memory_space<vmem>>) attributes {dimension_semantics = [#tpu.dimension_semantics<parallel>, #tpu.dimension_semantics<parallel>], iteration_bounds = array<i64: 1, 1>, scalar_prefetch = 0 : i64, scratch_operands = 0 : i64, tpu.core_type = #tpu.core_type<tc>, window_params = [{transform_indices = @transform_0, window_bounds = array<i64: 16, 128>}, {transform_indices = @transform_1, window_bounds = array<i64: 128, 128>}, {transform_indices = @transform_2, window_bounds = array<i64: 16, 128>}]} {
    %c0 = arith.constant 0 : index
    %c0_0 = arith.constant 0 : index
    %0 = vector.load %arg2[%c0, %c0_0] : memref<16x128xf32, #tpu.memory_space<vmem>>, vector<16x128xf32>
    %c0_1 = arith.constant 0 : index
    %c0_2 = arith.constant 0 : index
    %1 = vector.load %arg3[%c0_1, %c0_2] : memref<128x128xf32, #tpu.memory_space<vmem>>, vector<128x128xf32>
    %cst = arith.constant dense<0.000000e+00> : vector<16x128xf32>
    %2 = tpu.matmul %0, %1, %cst {dimension_numbers = #tpu.dot_dimension_numbers<[1], [0], [0], [1], [0, 0, 1, 1], [], []>} : vector<16x128xf32>, vector<128x128xf32>, vector<16x128xf32> -> vector<16x128xf32>
    %c0_3 = arith.constant 0 : index
    %c0_4 = arith.constant 0 : index
    %3 = vector.load %arg4[%c0_3, %c0_4] : memref<16x128xf32, #tpu.memory_space<vmem>>, vector<16x128xf32>
    tpu.vector_store %arg4[%c0_3, %c0_4], %2 {strides = array<i32>} : memref<16x128xf32, #tpu.memory_space<vmem>>, vector<16x128xf32>,
    return
  }
  func.func @transform_0(%arg0: i32, %arg1: i32) -> (i32, i32) {
    %c0_i32 = arith.constant 0 : i32
    %c0_i32_0 = arith.constant 0 : i32
    return %arg0, %c0_i32 : i32, i32
  }
  func.func @transform_1(%arg0: i32, %arg1: i32) -> (i32, i32) {
    %c0_i32 = arith.constant 0 : i32
    %c0_i32_0 = arith.constant 0 : i32
    return %c0_i32, %arg1 : i32, i32
  }
  func.func @transform_2(%arg0: i32, %arg1: i32) -> (i32, i32) {
    %c0_i32 = arith.constant 0 : i32
    return %arg0, %arg1 : i32, i32
  }
}

</mosaic_0001>

<bundles_post_ra>
// kernel: _linear_apply.1
= control target key start
LH: loop header
LB: loop body
LE: loop exit
PB: predicated region body
PF: predicated region fallthrough
CT: control target
= control target key end

     0   :  { %7 = vsyncpa [#allocation3], 0  ;;  %s120_s12 = smov [#allocation2]   ;;  %s121_s14 = smov 128   ;;  %s153_s0 = inlined_call_operand.vmem [shape: f32[16,128], index: 0, kind: input, shape index: {}]   ;;  %s154_s1 = inlined_call_operand.hbm [shape: f32[128,128], index: 1, kind: input, shape index: {}]   ;;  %s155_s2 = inlined_call_operand.vmem [shape: f32[16,128], index: 2, kind: output, shape index: {}]  }
   0x1   :  { %s14_s11 = sshll.u32 %s154_s1, 4  ;;  %s16_s13 = sshll.u32 %s120_s12, 4  ;;  %s15_s11 = int_to_ptr.hbm [resolvable:$true] %s14_s11  ;;  %s17_s13 = int_to_ptr.vmem [resolvable:$true] %s16_s13 }
   0x2   :  { %s122_s15 = smov 8  }
   0x3   :  { %22 = dma.hbm_to_vmem [thread:$0]  %s15_s11, 2048, %s17_s13, [#allocation3], %s121_s14, %s121_s14, %s122_s15  }
   0x4   :  { %118 = dma.done.wait [#allocation3], 2048  }
   0x5   :  { %119 = vsyncadd [#allocation3], 4294965248  ;;  %v44_v0 = vld [vmem:[#allocation2 + $0x78] sm:$0xff]  ;;  %v43_v1 = vld [vmem:[#allocation2 + $0x70] sm:$0xff] }
   0x6   :  { %45 = vmatpush.msra.mxu0 %v44_v0  ;;  %75 = vmatpush.msra.mxu1 %v44_v0  ;;  %v42_v2 = vld [vmem:[#allocation2 + $0x68] sm:$0xff]  ;;  %v41_v3 = vld [vmem:[#allocation2 + $0x60] sm:$0xff]  ;;  %v40_v4 = vld [vmem:[#allocation2 + $0x58] sm:$0xff] }
   0x7   :  { %v39_v5 = vld [vmem:[#allocation2 + $0x50] sm:$0xff]  ;;  %v38_v6 = vld [vmem:[#allocation2 + $0x48] sm:$0xff]  ;;  %v37_v7 = vld [vmem:[#allocation2 + $0x40] sm:$0xff] }
   0x8   :  { %46 = vmatpush.msra.mxu0 %v43_v1  ;;  %76 = vmatpush.msra.mxu1 %v43_v1  ;;  %v36_v8 = vld [vmem:[#allocation2 + $0x38] sm:$0xff]  ;;  %v35_v9 = vld [vmem:[#allocation2 + $0x30] sm:$0xff]  ;;  %v34_v10 = vld [vmem:[#allocation2 + $0x28] sm:$0xff] }
   0x9   :  { %v33_v11 = vld [vmem:[#allocation2 + $0x20] sm:$0xff]  ;;  %v32_v12 = vld [vmem:[#allocation2 + $0x18] sm:$0xff]  ;;  %v31_v13 = vld [vmem:[#allocation2 + $0x10] sm:$0xff] }
   0xa   :  { %47 = vmatpush.msra.mxu0 %v42_v2  ;;  %77 = vmatpush.msra.mxu1 %v42_v2  ;;  %v30_v14 = vld [vmem:[#allocation2 + $0x8] sm:$0xff]  ;;  %v29_v15 = vld [vmem:[#allocation2] sm:$0xff] }
   0xb   :  { %v27_v16 = vld [vmem:[%s153_s0] sm:$0xff]  ;;  %v28_v17 = vld [vmem:[%s153_s0 + $0x8] sm:$0xff] }
   0xc   :  { %48 = vmatpush.msra.mxu0 %v41_v3  ;;  %78 = vmatpush.msra.mxu1 %v41_v3 }
   0xe   :  { %49 = vmatpush.msra.mxu0 %v40_v4  ;;  %79 = vmatpush.msra.mxu1 %v40_v4 }
  0x10   :  { %50 = vmatpush.msra.mxu0 %v39_v5  ;;  %80 = vmatpush.msra.mxu1 %v39_v5 }
  0x12   :  { %51 = vmatpush.msra.mxu0 %v38_v6  ;;  %81 = vmatpush.msra.mxu1 %v38_v6 }
  0x14   :  { %52 = vmatpush.msra.mxu0 %v37_v7  ;;  %82 = vmatpush.msra.mxu1 %v37_v7 }
  0x16   :  { %53 = vmatpush.msra.mxu0 %v36_v8  ;;  %83 = vmatpush.msra.mxu1 %v36_v8 }
  0x18   :  { %54 = vmatpush.msra.mxu0 %v35_v9  ;;  %84 = vmatpush.msra.mxu1 %v35_v9 }
  0x1a   :  { %55 = vmatpush.msra.mxu0 %v34_v10  ;;  %85 = vmatpush.msra.mxu1 %v34_v10 }
  0x1c   :  { %56 = vmatpush.msra.mxu0 %v33_v11  ;;  %86 = vmatpush.msra.mxu1 %v33_v11 }
  0x1e   :  { %57 = vmatpush.msra.mxu0 %v32_v12  ;;  %87 = vmatpush.msra.mxu1 %v32_v12 }
  0x20   :  { %58 = vmatpush.msra.mxu0 %v31_v13  ;;  %88 = vmatpush.msra.mxu1 %v31_v13 }
  0x22   :  { %59 = vmatpush.msra.mxu0 %v30_v14  ;;  %89 = vmatpush.msra.mxu1 %v30_v14 }
  0x24   :  { %60 = vmatpush.msra.mxu0 %v29_v15  ;;  %90 = vmatpush.msra.mxu1 %v29_v15 }
  0x25   :  { %61 = vmatmul.f32.vlgmr.msra.gmra.mxu0 %v27_v16  ;;  %64 = vmatmul.f32.vlgmr.msra.gmra.mxu1 %v28_v17 }
  0xa2   :  { %v62_v18 = vpop.f32.mrf.mxu0  ;;  %v65_v19 = vpop.f32.mrf.mxu1 }
  0xa3   :  { %68 = vst [vmem:[%s155_s2] sm:$0xff] %v62_v18 }
  0xa4   :  { %69 = vst [vmem:[%s155_s2 + $0x8] sm:$0xff] %v65_v19 }
  0xa5   :  { %74 = vsyncpa [#allocation3], 1 }

</bundles_post_ra>
